<compile_context>
chip_gen: v7x
topology: tpu7x:2x2x1
jax: 0.10.0
libtpu: 0.0.40
codegen_flags: <defaults>
</compile_context>

<pallas_src>
import jax
import jax.numpy as jnp
from jax.experimental import pallas as pl
from jax.experimental.pallas import tpu as pltpu

# Synthetic constants (const.APP_LSD / const.DYN_LSD are not available here)
APP_LSD = 16
DYN_LSD = 15
IN_DIM = 1 + APP_LSD + DYN_LSD   # 32
HID = 50
HID_PAD = 64                     # zero-padded hidden width (sublane/lane friendly)
OUT_DIM = APP_LSD                # 16
NEG_SLOPE = 0.01                 # torch.nn.functional.leaky_relu default


def _round_up(x, m):
    return (x + m - 1) // m * m


def integrand_kernel(z_ref, w_ref, w1z_ref, w1w_ref, b1_ref,
                     w2_ref, b2_ref, w3_ref, b3_ref, o_ref):
    z = z_ref[...]                                   # (TB, APP_LSD)
    w = w_ref[...]                                   # (TB, DYN_LSD)
    # layer 1: the replicated-t column is already folded into b1_ref
    h = (jnp.dot(z, w1z_ref[...], preferred_element_type=jnp.float32)
         + jnp.dot(w, w1w_ref[...], preferred_element_type=jnp.float32)
         + b1_ref[...])
    h = jnp.maximum(h, NEG_SLOPE * h)                # leaky_relu, (TB, HID_PAD)
    # layer 2
    h = jnp.dot(h, w2_ref[...], preferred_element_type=jnp.float32) + b2_ref[...]
    h = jnp.maximum(h, NEG_SLOPE * h)                # (TB, HID_PAD)
    # layer 3 + sigmoid (exp + approx reciprocal -> EUP slot)
    h = jnp.dot(h, w3_ref[...], preferred_element_type=jnp.float32) + b3_ref[...]
    o_ref[...] = pl.reciprocal(1.0 + jnp.exp(-h), approx=True)   # (TB, OUT_DIM)


def integrand_forward(t, z, w, params, *, block_batch=8192):
    """t: scalar, z: (B, APP_LSD), w: (B, DYN_LSD) -> (B, APP_LSD)."""
    batch = z.shape[0]
    w1z, w1w, w1t, b1, w2, b2, w3, b3 = params

    # Fold t into the first-layer bias: tiny (1, HID_PAD) op, replaces the
    # (B, 1) t-column + concat of the original module.
    b1_eff = b1 + jnp.asarray(t, jnp.float32) * w1t

    tb = min(block_batch, _round_up(batch, 8))       # batch tile (multiple of 8)
    grid = (pl.cdiv(batch, tb),)

    def row_spec(d):
        return pl.BlockSpec((tb, d), lambda i: (i, 0))

    def const_spec(shape):
        return pl.BlockSpec(shape, lambda i: (0, 0))

    return pl.pallas_call(
        integrand_kernel,
        out_shape=jax.ShapeDtypeStruct((batch, OUT_DIM), jnp.float32),
        grid=grid,
        in_specs=[
            row_spec(APP_LSD),                       # z        (streamed)
            row_spec(DYN_LSD),                       # w        (streamed)
            const_spec((APP_LSD, HID_PAD)),          # W1[z-rows]
            const_spec((DYN_LSD, HID_PAD)),          # W1[w-rows]
            const_spec((1, HID_PAD)),                # b1 (+ t * W1[t-row])
            const_spec((HID_PAD, HID_PAD)),          # W2
            const_spec((1, HID_PAD)),                # b2
            const_spec((HID_PAD, OUT_DIM)),          # W3
            const_spec((1, OUT_DIM)),                # b3
        ],
        out_specs=row_spec(OUT_DIM),
        compiler_params=pltpu.CompilerParams(
            dimension_semantics=("parallel",)),
    )(z, w, w1z, w1w, b1_eff, w2, b2, w3, b3)


def init_params(key):
    """PyTorch-equivalent init; weights stored as (in, out), biases as (1, out)."""
    ks = jax.random.split(key, 6)

    def linear(kw, kb, fan_in, fan_out):
        bound = 1.0 / jnp.sqrt(fan_in)
        w = jax.random.uniform(kw, (fan_in, fan_out), jnp.float32, -bound, bound)
        b = jax.random.uniform(kb, (1, fan_out), jnp.float32, -bound, bound)
        return w, b

    w1, b1 = linear(ks[0], ks[1], IN_DIM, HID)
    w2, b2 = linear(ks[2], ks[3], HID, HID)
    w3, b3 = linear(ks[4], ks[5], HID, OUT_DIM)
    return (w1, b1, w2, b2, w3, b3)


def prepare_params(params):
    """Split W1 into (t, z, w) row groups and zero-pad the hidden dim to HID_PAD."""
    w1, b1, w2, b2, w3, b3 = params
    ph = HID_PAD - HID
    w1t = jnp.pad(w1[0:1, :],            ((0, 0), (0, ph)))    # (1, HID_PAD)
    w1z = jnp.pad(w1[1:1 + APP_LSD, :],  ((0, 0), (0, ph)))    # (APP_LSD, HID_PAD)
    w1w = jnp.pad(w1[1 + APP_LSD:, :],   ((0, 0), (0, ph)))    # (DYN_LSD, HID_PAD)
    b1p = jnp.pad(b1, ((0, 0), (0, ph)))                       # (1, HID_PAD)
    w2p = jnp.pad(w2, ((0, ph), (0, ph)))                      # (HID_PAD, HID_PAD)
    b2p = jnp.pad(b2, ((0, 0), (0, ph)))                       # (1, HID_PAD)
    w3p = jnp.pad(w3, ((0, ph), (0, 0)))                       # (HID_PAD, OUT_DIM)
    return (w1z, w1w, w1t, b1p, w2p, b2p, w3p, b3)


if __name__ == "__main__":
    key = jax.random.PRNGKey(0)
    kp, kz, kw = jax.random.split(key, 3)

    batch = 8
    torch_params = init_params(kp)          # original (unpadded) layout
    params = prepare_params(torch_params)   # kernel layout (split + zero-padded)
    z = jax.random.normal(kz, (batch, APP_LSD), jnp.float32)
    w = jax.random.normal(kw, (batch, DYN_LSD), jnp.float32)
    t = jnp.float32(0.5)

    out = integrand_forward(t, z, w, params)
    jax.block_until_ready(out)

    # Pure-JAX reference (exact math, unpadded) — same semantics as the torch module.
    w1, b1, w2, b2, w3, b3 = torch_params
    t_col = jnp.full((batch, 1), t, jnp.float32)
    x = jnp.concatenate((t_col, z, w), axis=1)
    h = jax.nn.leaky_relu(x @ w1 + b1, NEG_SLOPE)
    h = jax.nn.leaky_relu(h @ w2 + b2, NEG_SLOPE)
    ref = jax.nn.sigmoid(h @ w3 + b3)

    assert out.shape == (batch, OUT_DIM)
    # tolerance covers the EUP approx-reciprocal in the sigmoid (~2^-12 rel err)
    assert jnp.allclose(out, ref, atol=2e-3), "mismatch vs reference"

    print("KERNEL_OK")
</pallas_src>

<mosaic_0001>
module attributes {stable_mosaic.version = 11 : i64} {
  func.func @integrand_kernel(%arg0: i32, %arg1: memref<8x16xf32, #tpu.memory_space<vmem>>, %arg2: memref<8x15xf32, #tpu.memory_space<vmem>>, %arg3: memref<16x64xf32, #tpu.memory_space<vmem>>, %arg4: memref<15x64xf32, #tpu.memory_space<vmem>>, %arg5: memref<1x64xf32, #tpu.memory_space<vmem>>, %arg6: memref<64x64xf32, #tpu.memory_space<vmem>>, %arg7: memref<1x64xf32, #tpu.memory_space<vmem>>, %arg8: memref<64x16xf32, #tpu.memory_space<vmem>>, %arg9: memref<1x16xf32, #tpu.memory_space<vmem>>, %arg10: memref<8x16xf32, #tpu.memory_space<vmem>>) attributes {dimension_semantics = [#tpu.dimension_semantics<parallel>], iteration_bounds = array<i64: 1>, scalar_prefetch = 0 : i64, scratch_operands = 0 : i64, tpu.core_type = #tpu.core_type<tc>, window_params = [{transform_indices = @transform_0, window_bounds = array<i64: 8, 16>}, {transform_indices = @transform_1, window_bounds = array<i64: 8, 15>}, {pipeline_mode = #tpu.pipeline_mode<synchronous>, transform_indices = @transform_2, window_bounds = array<i64: 16, 64>}, {pipeline_mode = #tpu.pipeline_mode<synchronous>, transform_indices = @transform_3, window_bounds = array<i64: 15, 64>}, {pipeline_mode = #tpu.pipeline_mode<synchronous>, transform_indices = @transform_4, window_bounds = array<i64: 1, 64>}, {pipeline_mode = #tpu.pipeline_mode<synchronous>, transform_indices = @transform_5, window_bounds = array<i64: 64, 64>}, {pipeline_mode = #tpu.pipeline_mode<synchronous>, transform_indices = @transform_6, window_bounds = array<i64: 1, 64>}, {pipeline_mode = #tpu.pipeline_mode<synchronous>, transform_indices = @transform_7, window_bounds = array<i64: 64, 16>}, {pipeline_mode = #tpu.pipeline_mode<synchronous>, transform_indices = @transform_8, window_bounds = array<i64: 1, 16>}, {transform_indices = @transform_9, window_bounds = array<i64: 8, 16>}]} {
    %c0 = arith.constant 0 : index
    %c0_0 = arith.constant 0 : index
    %0 = vector.load %arg1[%c0, %c0_0] : memref<8x16xf32, #tpu.memory_space<vmem>>, vector<8x16xf32>
    %c0_1 = arith.constant 0 : index
    %c0_2 = arith.constant 0 : index
    %1 = vector.load %arg2[%c0_1, %c0_2] : memref<8x15xf32, #tpu.memory_space<vmem>>, vector<8x15xf32>
    %c0_3 = arith.constant 0 : index
    %c0_4 = arith.constant 0 : index
    %2 = vector.load %arg3[%c0_3, %c0_4] : memref<16x64xf32, #tpu.memory_space<vmem>>, vector<16x64xf32>
    %cst = arith.constant dense<0.000000e+00> : vector<8x64xf32>
    %3 = tpu.matmul %0, %2, %cst {dimension_numbers = #tpu.dot_dimension_numbers<[1], [0], [0], [1], [0, 0, 1, 1], [], []>} : vector<8x16xf32>, vector<16x64xf32>, vector<8x64xf32> -> vector<8x64xf32>
    %c0_5 = arith.constant 0 : index
    %c0_6 = arith.constant 0 : index
    %4 = vector.load %arg4[%c0_5, %c0_6] : memref<15x64xf32, #tpu.memory_space<vmem>>, vector<15x64xf32>
    %cst_7 = arith.constant dense<0.000000e+00> : vector<8x64xf32>
    %5 = tpu.matmul %1, %4, %cst_7 {dimension_numbers = #tpu.dot_dimension_numbers<[1], [0], [0], [1], [0, 0, 1, 1], [], []>} : vector<8x15xf32>, vector<15x64xf32>, vector<8x64xf32> -> vector<8x64xf32>
    %6 = arith.addf %3, %5 : vector<8x64xf32>
    %c0_8 = arith.constant 0 : index
    %c0_9 = arith.constant 0 : index
    %7 = vector.load %arg5[%c0_8, %c0_9] : memref<1x64xf32, #tpu.memory_space<vmem>>, vector<1x64xf32>
    %8 = vector.broadcast %7 : vector<1x64xf32> to vector<8x64xf32>
    %9 = arith.addf %6, %8 : vector<8x64xf32>
    %cst_10 = arith.constant 0.00999999977 : f32
    %10 = vector.broadcast %cst_10 : f32 to vector<8x64xf32>
    %11 = arith.mulf %10, %9 : vector<8x64xf32>
    %12 = arith.maximumf %9, %11 : vector<8x64xf32>
    %c0_11 = arith.constant 0 : index
    %c0_12 = arith.constant 0 : index
    %13 = vector.load %arg6[%c0_11, %c0_12] : memref<64x64xf32, #tpu.memory_space<vmem>>, vector<64x64xf32>
    %cst_13 = arith.constant dense<0.000000e+00> : vector<8x64xf32>
    %14 = tpu.matmul %12, %13, %cst_13 {dimension_numbers = #tpu.dot_dimension_numbers<[1], [0], [0], [1], [0, 0, 1, 1], [], []>} : vector<8x64xf32>, vector<64x64xf32>, vector<8x64xf32> -> vector<8x64xf32>
    %c0_14 = arith.constant 0 : index
    %c0_15 = arith.constant 0 : index
    %15 = vector.load %arg7[%c0_14, %c0_15] : memref<1x64xf32, #tpu.memory_space<vmem>>, vector<1x64xf32>
    %16 = vector.broadcast %15 : vector<1x64xf32> to vector<8x64xf32>
    %17 = arith.addf %14, %16 : vector<8x64xf32>
    %cst_16 = arith.constant 0.00999999977 : f32
    %18 = vector.broadcast %cst_16 : f32 to vector<8x64xf32>
    %19 = arith.mulf %18, %17 : vector<8x64xf32>
    %20 = arith.maximumf %17, %19 : vector<8x64xf32>
    %c0_17 = arith.constant 0 : index
    %c0_18 = arith.constant 0 : index
    %21 = vector.load %arg8[%c0_17, %c0_18] : memref<64x16xf32, #tpu.memory_space<vmem>>, vector<64x16xf32>
    %cst_19 = arith.constant dense<0.000000e+00> : vector<8x16xf32>
    %22 = tpu.matmul %20, %21, %cst_19 {dimension_numbers = #tpu.dot_dimension_numbers<[1], [0], [0], [1], [0, 0, 1, 1], [], []>} : vector<8x64xf32>, vector<64x16xf32>, vector<8x16xf32> -> vector<8x16xf32>
    %c0_20 = arith.constant 0 : index
    %c0_21 = arith.constant 0 : index
    %23 = vector.load %arg9[%c0_20, %c0_21] : memref<1x16xf32, #tpu.memory_space<vmem>>, vector<1x16xf32>
    %24 = vector.broadcast %23 : vector<1x16xf32> to vector<8x16xf32>
    %25 = arith.addf %22, %24 : vector<8x16xf32>
    %cst_22 = arith.constant 0.000000e+00 : f32
    %26 = vector.broadcast %cst_22 : f32 to vector<8x16xf32>
    %27 = arith.subf %26, %25 : vector<8x16xf32>
    %28 = math.exp %27 : vector<8x16xf32>
    %cst_23 = arith.constant 1.000000e+00 : f32
    %29 = vector.broadcast %cst_23 : f32 to vector<8x16xf32>
    %30 = arith.addf %29, %28 : vector<8x16xf32>
    %31 = tpu.reciprocal %30 {approx = true} : vector<8x16xf32> -> vector<8x16xf32>
    %c0_24 = arith.constant 0 : index
    %c0_25 = arith.constant 0 : index
    %32 = vector.load %arg10[%c0_24, %c0_25] : memref<8x16xf32, #tpu.memory_space<vmem>>, vector<8x16xf32>
    tpu.vector_store %arg10[%c0_24, %c0_25], %31 {strides = array<i32>} : memref<8x16xf32, #tpu.memory_space<vmem>>, vector<8x16xf32>,
    return
  }
  func.func @transform_0(%arg0: i32) -> (i32, i32) {
    %c0_i32 = arith.constant 0 : i32
    %c0_i32_0 = arith.constant 0 : i32
    return %arg0, %c0_i32 : i32, i32
  }
  func.func @transform_1(%arg0: i32) -> (i32, i32) {
    %c0_i32 = arith.constant 0 : i32
    %c0_i32_0 = arith.constant 0 : i32
    return %arg0, %c0_i32 : i32, i32
  }
  func.func @transform_2(%arg0: i32) -> (i32, i32) {
    %c0_i32 = arith.constant 0 : i32
    %c0_i32_0 = arith.constant 0 : i32
    %c0_i32_1 = arith.constant 0 : i32
    return %c0_i32, %c0_i32_0 : i32, i32
  }
  func.func @transform_3(%arg0: i32) -> (i32, i32) {
    %c0_i32 = arith.constant 0 : i32
    %c0_i32_0 = arith.constant 0 : i32
    %c0_i32_1 = arith.constant 0 : i32
    return %c0_i32, %c0_i32_0 : i32, i32
  }
  func.func @transform_4(%arg0: i32) -> (i32, i32) {
    %c0_i32 = arith.constant 0 : i32
    %c0_i32_0 = arith.constant 0 : i32
    %c0_i32_1 = arith.constant 0 : i32
    return %c0_i32, %c0_i32_0 : i32, i32
  }
  func.func @transform_5(%arg0: i32) -> (i32, i32) {
    %c0_i32 = arith.constant 0 : i32
    %c0_i32_0 = arith.constant 0 : i32
    %c0_i32_1 = arith.constant 0 : i32
    return %c0_i32, %c0_i32_0 : i32, i32
  }
  func.func @transform_6(%arg0: i32) -> (i32, i32) {
    %c0_i32 = arith.constant 0 : i32
    %c0_i32_0 = arith.constant 0 : i32
    %c0_i32_1 = arith.constant 0 : i32
    return %c0_i32, %c0_i32_0 : i32, i32
  }
  func.func @transform_7(%arg0: i32) -> (i32, i32) {
    %c0_i32 = arith.constant 0 : i32
    %c0_i32_0 = arith.constant 0 : i32
    %c0_i32_1 = arith.constant 0 : i32
    return %c0_i32, %c0_i32_0 : i32, i32
  }
  func.func @transform_8(%arg0: i32) -> (i32, i32) {
    %c0_i32 = arith.constant 0 : i32
    %c0_i32_0 = arith.constant 0 : i32
    %c0_i32_1 = arith.constant 0 : i32
    return %c0_i32, %c0_i32_0 : i32, i32
  }
  func.func @transform_9(%arg0: i32) -> (i32, i32) {
    %c0_i32 = arith.constant 0 : i32
    %c0_i32_0 = arith.constant 0 : i32
    return %arg0, %c0_i32 : i32, i32
  }
}

</mosaic_0001>

<bundles_post_ra>
// kernel: tpu_custom_call.1
= control target key start
LH: loop header
LB: loop body
LE: loop exit
PB: predicated region body
PF: predicated region fallthrough
CT: control target
= control target key end

     0   :  { %14 = vsyncpa [#allocation3], 0  ;;  %s814_s0 = inlined_call_operand.vmem [shape: f32[8,16], index: 0, kind: input, shape index: {}]   ;;  %s815_s1 = inlined_call_operand.hbm [shape: f32[8,15], index: 1, kind: input, shape index: {}]   ;;  %s816_s2 = inlined_call_operand.vmem [shape: f32[16,64], index: 2, kind: input, shape index: {}]   ;;  %s817_s3 = inlined_call_operand.hbm [shape: f32[15,64], index: 3, kind: input, shape index: {}]   ;;  %s818_s4 = inlined_call_operand.vmem [shape: f32[1,64], index: 4, kind: input, shape index: {}]   ;;  %s819_s5 = inlined_call_operand.vmem [shape: f32[64,64], index: 5, kind: input, shape index: {}]   ;;  %s820_s6 = inlined_call_operand.vmem [shape: f32[1,64], index: 6, kind: input, shape index: {}]   ;;  %s821_s7 = inlined_call_operand.vmem [shape: f32[64,16], index: 7, kind: input, shape index: {}]   ;;  %s822_s8 = inlined_call_operand.vmem [shape: f32[1,16], index: 8, kind: input, shape index: {}]   ;;  %s823_s9 = inlined_call_operand.hbm [shape: f32[8,16], index: 9, kind: output, shape index: {}]  }
   0x1   :  { %15 = vsyncpa [#allocation6], 0 }
   0x2   :  { %16 = vsyncpa [#allocation4], 0  ;;  %s628_s30 = smov [#allocation2]   ;;  %s629_s11 = smov [#allocation5]  }
   0x3   :  { %s25_s10 = sshll.u32 %s628_s30, 4  ;;  %s36_s12 = sshll.u32 %s629_s11, 4  ;;  %s26_s10 = int_to_ptr.vmem [resolvable:$true] %s25_s10  ;;  %s687_s12 = int_to_ptr.vmem [resolvable:$true] %s36_s12 }
   0x4   :  { %s556_s15 = scalar_lea.hbm %s815_s1, 128 }
   0x5   :  { %p557_p0 = scmp.ne.s32.totalorder %s815_s1, %s556_s15  ;;  %p560_p1 = scmp.lt.u32.totalorder %s556_s15, %s815_s1 }
   0x7   :  { %p562_p2 = pnand %p560_p1, %p557_p0 }
   0x9   :  { %565 = shalt.err (!%p562_p2)
}
   0xa   :  { %s566_s20 = scalar_lea.vmem %s26_s10, 128  ;;  %p571_p4 = scmp.lt.s32.totalorder %s26_s10, %s26_s10 }
   0xb   :  { %p567_p3 = scmp.ne.s32.totalorder %s26_s10, %s566_s20  ;;  %p572_p5 = scmp.lt.s32.totalorder %s566_s20, %s566_s20 }
   0xd   :  { %p573_p6 = por %p572_p5, %p571_p4 }
   0xf   :  { %p574_p7 = pnand %p573_p6, %p567_p3 }
  0x11   :  { %577 = shalt.err (!%p574_p7)
}
  0x12   :  { %28 = dma.hbm_to_vmem [thread:$0]  %s815_s1, 128, %s26_s10, [#allocation3]  }
  0x13   :  { %s578_s25 = scalar_lea.hbm %s817_s3, 256 }
  0x14   :  { %p579_p8 = scmp.ne.s32.totalorder %s817_s3, %s578_s25  ;;  %p582_p9 = scmp.lt.u32.totalorder %s578_s25, %s817_s3 }
  0x16   :  { %p584_p10 = pnand %p582_p9, %p579_p8 }
  0x18   :  { %587 = shalt.err (!%p584_p10)
}
  0x19   :  { %s588_s30 = scalar_lea.vmem %s687_s12, 256  ;;  %p593_p12 = scmp.lt.s32.totalorder %s687_s12, %s687_s12 }
  0x1a   :  { %p589_p11 = scmp.ne.s32.totalorder %s687_s12, %s588_s30  ;;  %p594_p13 = scmp.lt.s32.totalorder %s588_s30, %s588_s30 }
  0x1c   :  { %p595_p0 = por %p594_p13, %p593_p12 }
  0x1e   :  { %p596_p1 = pnand %p595_p0, %p589_p11 }
  0x20   :  { %599 = shalt.err (!%p596_p1)
}
  0x21   :  { %s630_s1 = smov 128   ;;  %s631_s10 = smov 8  }
  0x22   :  { %42 = dma.hbm_to_vmem [thread:$0]  %s817_s3, 256, %s687_s12, [#allocation6], %s630_s1, %s630_s1, %s631_s10  }
  0x23   :  { %622 = dma.done.wait [#allocation3], 128  }
  0x24   :  { %623 = vsyncadd [#allocation3], 4294967168 }
  0x25   :  { %624 = dma.done.wait [#allocation6], 256  }
  0x26   :  { %625 = vsyncadd [#allocation6], 4294967040  ;;  %v632_v0 = vmov 0.0|0.0   ;;  %vm633_vm0 = vmmov 0   ;;  %v634_v1 = vmov 0.0   ;;  %vm69_vm1 = vcmask 1046528  }
  0x27   :  { %512 = vmatprep.subr.bf16.mxu0 %v632_v0  ;;  %516 = vmatprep.subr.bf16.mxu1 %v632_v0  ;;  %vm635_vm2 = vmmov 1   ;;  %v63_v2 = vld [vmem:[#allocation5] sm:$0xff]  ;;  %v64_v3 = vld [vmem:[#allocation5 + $0x8] sm:$0x7f]  ;;  %v61_v4 = vld [vmem:[%s816_s2] sm:$0xff]  ;;  %vm65_vm4 = vcmask 121856  }
  0x28   :  { %464 = vmatprep.mubr.msk.f32.mxu0 %vm633_vm0, %v634_v1  ;;  %471 = vmatprep.mubr.msk.f32.mxu1 %vm633_vm0, %v634_v1  ;;  %vm514_vm3 = vmpackc.low %vm69_vm1, %vm635_vm2  ;;  %v513_v5 = vpack.c.bf16 %v64_v3, %v63_v2  ;;  %v62_v6 = vld [vmem:[%s816_s2 + $0x8] sm:$0xff]  ;;  %v227_v8 = vld [vmem:[%s819_s5] sm:$0xff]  ;;  %vm143_vm5 = vcmask 130048   ;;  %vm242_vm6 = vcmask 523264  }
  0x29   :  { %v517_v7 = vpack.c.bf16 %v62_v6, %v61_v4  ;;  %v228_v9 = vld [vmem:[%s819_s5 + $0x8] sm:$0xff]  ;;  %v60_v10 = vld [vmem:[#allocation2] sm:$0xff]  ;;  %v229_v13 = vld [vmem:[%s819_s5 + $0x10] sm:$0xff] }
  0x2a   :  { %515 = vmatpush3.bf16.msk.msra.mxu0 %vm514_vm3, %v513_v5  ;;  %v520_v11 = vpack.c.bf16 %v228_v9, %v227_v8  ;;  %v59_v12 = vld [vmem:[%s814_s0] sm:$0xff]  ;;  %v230_v14 = vld [vmem:[%s819_s5 + $0x18] sm:$0xff]  ;;  %v232_v17 = vld [vmem:[%s819_s5 + $0x28] sm:$0xff] }
  0x2b   :  { %518 = vmatpush3.bf16.msra.mxu1 %v517_v7  ;;  %519 = vmatprep.subr.bf16.mxu0 %v632_v0  ;;  %v523_v15 = vpack.c.bf16 %v230_v14, %v229_v13  ;;  %v231_v16 = vld [vmem:[%s819_s5 + $0x20] sm:$0xff]  ;;  %v233_v19 = vld [vmem:[%s819_s5 + $0x30] sm:$0xff]  ;;  %v234_v20 = vld [vmem:[%s819_s5 + $0x38] sm:$0xff] }
  0x2c   :  { %531 = vmatprep.subr.bf16.mxu1 %v632_v0  ;;  %v526_v18 = vpack.c.bf16 %v232_v17, %v231_v16  ;;  %v529_v21 = vpack.c.bf16 %v234_v20, %v233_v19  ;;  %v318_v22 = vld [vmem:[%s821_s7] sm:$0xff]  ;;  %v319_v23 = vld [vmem:[%s821_s7 + $0x8] sm:$0xff]  ;;  %v320_v24 = vld [vmem:[%s821_s7 + $0x10] sm:$0xff] }
  0x2d   :  { %465 = vmatmul.mubr.msk.f32.vlgmr.msra.gmra.mrb[0].mxu0 %vm65_vm4, %v60_v10  ;;  %v532_v25 = vpack.c.bf16 %v319_v23, %v318_v22  ;;  %v321_v26 = vld [vmem:[%s821_s7 + $0x18] sm:$0xff]  ;;  %v431_v30 = vld [vmem:[%s818_s4] ss:$0 sm:$0xff]  ;;  %v323_v38 = vld [vmem:[%s821_s7 + $0x28] sm:$0xff] }
  0x2e   :  { %472 = vmatmul.mubr.msk.f32.vlgmr.msra.gmra.mrb[0].mxu1 %vm143_vm5, %v59_v12  ;;  %521 = vmatpush3.bf16.msra.mxu0 %v520_v11  ;;  %v535_v27 = vpack.c.bf16 %v321_v26, %v320_v24  ;;  %v322_v37 = vld [vmem:[%s821_s7 + $0x20] sm:$0xff]  ;;  %v324_v40 = vld [vmem:[%s821_s7 + $0x30] sm:$0xff]  ;;  %v325_v41 = vld [vmem:[%s821_s7 + $0x38] sm:$0xff] }
  0x2f   :  { %522 = vmatprep.subr.bf16.mxu0 %v632_v0  ;;  %490 = vmatprep.mubr.msk.f32.mxu0 %vm633_vm0, %v634_v1  ;;  %v538_v39 = vpack.c.bf16 %v323_v38, %v322_v37  ;;  %v541_v42 = vpack.c.bf16 %v325_v41, %v324_v40  ;;  %v432_v43 = vld [vmem:[%s820_s6] ss:$0 sm:$0xff]  ;;  %s636_s6 = smov [#allocation7]  }
  0x30   :  { %509 = vmatprep.mubr.msk.f32.mxu1 %vm633_vm0, %v634_v1  ;;  %533 = vmatpush3.bf16.msra.mxu1 %v532_v25  ;;  %v434_v49 = vld [vmem:[%s822_s8] ss:$0 sm:$0xff]  ;;  %s418_s7 = sshll.u32 %s636_s6, 4  ;;  %s419_s7 = int_to_ptr.vmem [resolvable:$true] %s418_s7 }
  0x31   :  { %534 = vmatprep.subr.bf16.mxu1 %v632_v0  ;;  %s600_s27 = scalar_lea.vmem %s419_s7, 128  ;;  %p605_p3 = scmp.lt.s32.totalorder %s419_s7, %s419_s7 }
  0x32   :  { %524 = vmatpush3.bf16.msra.mxu0 %v523_v15  ;;  %p601_p2 = scmp.ne.s32.totalorder %s419_s7, %s600_s27  ;;  %p606_p4 = scmp.lt.s32.totalorder %s600_s27, %s600_s27 }
  0x33   :  { %525 = vmatprep.subr.bf16.mxu0 %v632_v0 }
  0x34   :  { %536 = vmatpush3.bf16.msra.mxu1 %v535_v27  ;;  %p607_p5 = por %p606_p4, %p605_p3 }
  0x35   :  { %537 = vmatprep.subr.bf16.mxu1 %v632_v0 }
  0x36   :  { %527 = vmatpush3.bf16.msra.mxu0 %v526_v18  ;;  %p608_p6 = pnand %p607_p5, %p601_p2 }
  0x37   :  { %528 = vmatprep.subr.bf16.mxu0 %v632_v0 }
  0x38   :  { %539 = vmatpush3.bf16.msra.mxu1 %v538_v39 }
  0x39   :  { %540 = vmatprep.subr.bf16.mxu1 %v632_v0 }
  0x3a   :  { %530 = vmatpush3.bf16.msra.mxu0 %v529_v21 }
  0x3c   :  { %542 = vmatpush3.bf16.msra.mxu1 %v541_v42 }
 0x100   :  { %v139_v28 = vpop.f32.mrb[0].mxu0 }
 0x101   :  { %v213_v29 = vpop.f32.mrb[0].mxu1  ;;  %v466_v31 = vpop.f32.mrb[1].mxu0 }
 0x102   :  { %v214_v32 = vadd.f32 %v213_v29, %v139_v28  ;;  %v473_v33 = vpop.f32.mrb[1].mxu1 }
 0x104   :  { %v224_v34 = vadd.f32 %v431_v30, %v214_v32 }
 0x106   :  { %v225_v35 = vmul.f32 0.01, %v224_v34 }
 0x108   :  { %v226_v36 = vmax.f32 %v224_v34, %v225_v35 }
 0x10a   :  { %491 = vmatmul.mubr.msk.f32.vlgmr.msra.gmra.mrb[2].mxu0 %vm242_vm6, %v226_v36 }
 0x1dd   :  { %v312_v44 = vpop.f32.mrb[2].mxu0 }
 0x1de   :  { %v313_v45 = vadd.f32 %v432_v43, %v312_v44  ;;  %v492_v46 = vpop.f32.mrb[3].mxu0 }
 0x1e0   :  { %v316_v47 = vmul.f32 0.01, %v313_v45 }
 0x1e2   :  { %v317_v48 = vmax.f32 %v313_v45, %v316_v47 }
 0x1e4   :  { %510 = vmatmul.mubr.msk.f32.vlgmr.msra.gmra.mrb[2].mxu1 %vm242_vm6, %v317_v48 }
 0x2b7   :  { %v402_v50 = vpop.f32.mrb[2].mxu1 }
 0x2b8   :  { %v403_v51 = vadd.f32 %v434_v49, %v402_v50  ;;  %v511_v52 = vpop.f32.mrb[3].mxu1 }
 0x2ba   :  { %v406_v53 = vsub.f32 0.0, %v403_v51 }
 0x2bc   :  { %v407_v54 = vmul.f32 1.442695, %v406_v53 }
 0x2be   :  { %552 = vpow2.f32 %v407_v54 }
 0x2c8   :  { %v553_v55 = vpop.eup %552 }
 0x2c9   :  { %v409_v56 = vadd.f32 1.0, %v553_v55 }
 0x2cb   :  { %554 = vrcp.f32 %v409_v56 }
 0x2d5   :  { %v555_v57 = vpop.eup %554 }
 0x2d6   :  { %411 = vst.msk [vmem:[#allocation7] sm:$0xff] %vm143_vm5, %v555_v57 }
 0x2d7   :  { %611 = shalt.err (!%p608_p6)
}
 0x2d8   :  { %s612_s29 = scalar_lea.hbm %s823_s9, 128 }
 0x2d9   :  { %p613_p7 = scmp.ne.s32.totalorder %s823_s9, %s612_s29  ;;  %p616_p8 = scmp.lt.u32.totalorder %s612_s29, %s823_s9 }
 0x2db   :  { %p618_p9 = pnand %p616_p8, %p613_p7 }
 0x2dd   :  { %621 = shalt.err (!%p618_p9)
}
 0x2de   :  { %421 = dma.vmem_to_hbm [thread:$0]  %s419_s7, 128, %s823_s9, [#allocation4]  }
 0x2df   :  { %626 = dma.done.wait [#allocation4], 128  }
 0x2e0   :  { %627 = vsyncadd [#allocation4], 4294967168 }
 0x2e1   :  { %425 = vsyncpa [#allocation3], 1 }
 0x2e2   :  { %426 = vsyncpa [#allocation6], 1 }
 0x2e3   :  { %427 = vsyncpa [#allocation4], 1 }

</bundles_post_ra>
